<compile_context>
chip_gen: v7x
topology: tpu7x:2x2x1
jax: 0.10.0
libtpu: 0.0.40
codegen_flags: <defaults>
</compile_context>

<pallas_src>
import functools

import jax
import jax.numpy as jnp
from jax.experimental import pallas as pl
from jax.experimental.pallas import tpu as pltpu


def _choose_hw_tile(hw, max_tile=2048):
    """Largest HW tile <= max_tile that divides HW, preferring multiples of 128."""
    if hw <= max_tile:
        return hw
    t = max_tile - (max_tile % 128)
    while t >= 128:
        if hw % t == 0:
            return t
        t -= 128
    for t in range(max_tile, 0, -1):
        if hw % t == 0:
            return t
    return hw


def _pool_attn_kernel(inv_hw, s_ref, c_ref, wst_ref, wct_ref, w3t_ref,
                      att_ref, ssum_ref, csum_ref):
    """Fused: global-average-pool of s and c (tiled over HW) + 1x1 convs on the
    pooled vectors + center-tap conv3x3 + ReLU + batch-dim softmax attention."""
    t = pl.program_id(0)

    @pl.when(t == 0)
    def _():
        ssum_ref[...] = jnp.zeros_like(ssum_ref)
        csum_ref[...] = jnp.zeros_like(csum_ref)

    # Running per-(batch, channel) sums over the HW (lane) axis.
    ssum_ref[...] += jnp.sum(s_ref[...], axis=-1)
    csum_ref[...] += jnp.sum(c_ref[...], axis=-1)

    @pl.when(t == pl.num_programs(0) - 1)
    def _():
        ps = ssum_ref[...] * inv_hw                      # mean(s) over HW   (B, C)
        pc = csum_ref[...] * inv_hw                      # mean(c) over HW   (B, C)
        # 1x1 convs (no bias) commute with the global mean: mean(W x) = W mean(x).
        pooled = (jnp.dot(ps, wst_ref[...], preferred_element_type=jnp.float32) +
                  jnp.dot(pc, wct_ref[...], preferred_element_type=jnp.float32))
        # conv3x3 on a 1x1 zero-padded input == matmul with the center tap.
        p = jnp.maximum(
            jnp.dot(pooled, w3t_ref[...], preferred_element_type=jnp.float32), 0.0)
        # bmm((B,C,1),(B,1,C)) -> per-batch outer products.
        a = p[:, :, None] * p[:, None, :]                # (B, C, C)
        # nn.Softmax() with no dim on a 3-D tensor -> legacy implicit dim=0 (batch).
        m = jnp.max(a, axis=0, keepdims=True)
        e = jnp.exp(a - m)
        a = e / jnp.sum(e, axis=0, keepdims=True)
        # bmm((B,C,C),(B,C,1)) -> (B, C)
        att_ref[...] = jnp.sum(a * p[:, None, :], axis=-1)


def _output_kernel(f_ref, w2_ref, att_ref, o_ref):
    """out = conv2(f) * att + f on an NCHW block with HW on the lane axis."""
    fblk = f_ref[0]                                                  # (C, tHW)
    f2 = jnp.dot(w2_ref[...], fblk, preferred_element_type=jnp.float32)
    o_ref[...] = (f2 * att_ref[0] + fblk)[None]                      # att_ref[0]: (C, 1)


@jax.jit
def pla_forward(f, s, c, ws, wc, w3, w2):
    """f, s, c: (B, C, H, W) float32 NCHW.  ws/wc/w2: (Cout, Cin).  w3: (Cout, Cin, 3, 3)."""
    B, C, H, W = f.shape
    HW = H * W
    thw = _choose_hw_tile(HW)
    n_hw = HW // thw

    # NCHW kept as-is; these reshapes are free (row-major views), no transposes.
    f3 = f.reshape(B, C, HW)
    s3 = s.reshape(B, C, HW)
    c3 = c.reshape(B, C, HW)
    wst, wct = ws.T, wc.T                     # tiny (C, C) transposes done once, outside kernels
    w3t = w3[:, :, 1, 1].T                    # only the center tap matters

    vmem_limit = 32 * 1024 * 1024

    # Kernel 1 (fused): pool s & c over HW (accumulated across HW tiles) + tiny attention math.
    att = pl.pallas_call(
        functools.partial(_pool_attn_kernel, 1.0 / HW),
        out_shape=jax.ShapeDtypeStruct((B, C), jnp.float32),
        grid=(n_hw,),
        in_specs=[
            pl.BlockSpec((B, C, thw), lambda t: (0, 0, t)),
            pl.BlockSpec((B, C, thw), lambda t: (0, 0, t)),
            pl.BlockSpec((C, C), lambda t: (0, 0)),
            pl.BlockSpec((C, C), lambda t: (0, 0)),
            pl.BlockSpec((C, C), lambda t: (0, 0)),
        ],
        out_specs=pl.BlockSpec((B, C), lambda t: (0, 0)),
        scratch_shapes=[pltpu.VMEM((B, C), jnp.float32),
                        pltpu.VMEM((B, C), jnp.float32)],
        compiler_params=pltpu.CompilerParams(
            dimension_semantics=("arbitrary",),          # running-sum + batch softmax need sequential HW
            vmem_limit_bytes=vmem_limit),
    )(s3, c3, wst, wct, w3t)

    # Kernel 2: per-(batch, HW-tile) 1x1 conv on f, scale by attention, residual add.
    out = pl.pallas_call(
        _output_kernel,
        out_shape=jax.ShapeDtypeStruct((B, C, HW), jnp.float32),
        grid=(B, n_hw),
        in_specs=[
            pl.BlockSpec((1, C, thw), lambda b, t: (b, 0, t)),
            pl.BlockSpec((C, C), lambda b, t: (0, 0)),
            pl.BlockSpec((1, C, 1), lambda b, t: (b, 0, 0)),
        ],
        out_specs=pl.BlockSpec((1, C, thw), lambda b, t: (b, 0, t)),
        input_output_aliases={0: 0},                      # write the residual result in place of f
        compiler_params=pltpu.CompilerParams(
            dimension_semantics=("parallel", "parallel"),
            vmem_limit_bytes=vmem_limit),
    )(f3, w2, att[:, :, None])

    return out.reshape(B, C, H, W)


def pla_reference(f, s, c, ws, wc, w3, w2):
    """Pure-JAX reference of the PyTorch forward, for verification."""
    sp = jnp.einsum('oi,bihw->bohw', ws, s)
    cp = jnp.einsum('oi,bihw->bohw', wc, c)
    pooled = jnp.mean(sp + cp, axis=(2, 3))                      # (B, C)
    p = jax.nn.relu(jnp.einsum('oi,bi->bo', w3[:, :, 1, 1], pooled))
    a = p[:, :, None] * p[:, None, :]                            # (B, C, C)
    a = jax.nn.softmax(a, axis=0)                                # legacy nn.Softmax() dim=0
    att = jnp.einsum('bij,bj->bi', a, p)                         # (B, C)
    f2 = jnp.einsum('oi,bihw->bohw', w2, f)
    return f2 * att[:, :, None, None] + f


if __name__ == "__main__":
    B, C, H, W = 2, 40, 16, 16  # n_feats=40 (module default); HW=256 is lane-dense
    key = jax.random.PRNGKey(0)
    kf, ks, kc, k1, k2, k3, k4 = jax.random.split(key, 7)
    f = jax.random.normal(kf, (B, C, H, W), jnp.float32)
    s = jax.random.normal(ks, (B, C, H, W), jnp.float32)
    c = jax.random.normal(kc, (B, C, H, W), jnp.float32)
    ws = 0.1 * jax.random.normal(k1, (C, C), jnp.float32)          # convs weight
    wc = 0.1 * jax.random.normal(k2, (C, C), jnp.float32)          # convc weight
    w3 = 0.1 * jax.random.normal(k3, (C, C, 3, 3), jnp.float32)    # p_layer conv3x3 weight
    w2 = 0.1 * jax.random.normal(k4, (C, C), jnp.float32)          # conv2 weight

    ref = jax.block_until_ready(pla_reference(f, s, c, ws, wc, w3, w2))
    out = jax.block_until_ready(pla_forward(f, s, c, ws, wc, w3, w2))
    assert out.shape == (B, C, H, W)
    err = float(jnp.max(jnp.abs(out - ref)))
    assert jnp.allclose(out, ref, rtol=1e-3, atol=1e-3), f"max abs err = {err}"
    print("KERNEL_OK")
</pallas_src>

<mosaic_0001>
module attributes {stable_mosaic.version = 11 : i64} {
  func.func @_pool_attn_kernel(%arg0: i32, %arg1: memref<2x40x256xf32, #tpu.memory_space<vmem>>, %arg2: memref<2x40x256xf32, #tpu.memory_space<vmem>>, %arg3: memref<40x40xf32, #tpu.memory_space<vmem>>, %arg4: memref<40x40xf32, #tpu.memory_space<vmem>>, %arg5: memref<40x40xf32, #tpu.memory_space<vmem>>, %arg6: memref<2x40xf32, #tpu.memory_space<vmem>>, %arg7: memref<2x40xf32, #tpu.memory_space<vmem>>, %arg8: memref<2x40xf32, #tpu.memory_space<vmem>>) attributes {dimension_semantics = [#tpu.dimension_semantics<arbitrary>], iteration_bounds = array<i64: 1>, scalar_prefetch = 0 : i64, scratch_operands = 2 : i64, tpu.core_type = #tpu.core_type<tc>, window_params = [{transform_indices = @transform_0, window_bounds = array<i64: 2, 40, 256>}, {transform_indices = @transform_1, window_bounds = array<i64: 2, 40, 256>}, {pipeline_mode = #tpu.pipeline_mode<synchronous>, transform_indices = @transform_2, window_bounds = array<i64: 40, 40>}, {pipeline_mode = #tpu.pipeline_mode<synchronous>, transform_indices = @transform_3, window_bounds = array<i64: 40, 40>}, {pipeline_mode = #tpu.pipeline_mode<synchronous>, transform_indices = @transform_4, window_bounds = array<i64: 40, 40>}, {pipeline_mode = #tpu.pipeline_mode<synchronous>, transform_indices = @transform_5, window_bounds = array<i64: 2, 40>}]} {
    %c0_i32 = arith.constant 0 : i32
    %0 = arith.cmpi eq, %arg0, %c0_i32 : i32
    %1 = arith.extui %0 : i1 to i32
    %c0_i32_0 = arith.constant 0 : i32
    %2 = arith.cmpi ne, %1, %c0_i32_0 : i32
    scf.if %2 {
      %cst_17 = arith.constant 0.000000e+00 : f32
      %16 = vector.broadcast %cst_17 : f32 to vector<2x40xf32>
      %c0_18 = arith.constant 0 : index
      %c0_19 = arith.constant 0 : index
      %17 = vector.load %arg7[%c0_18, %c0_19] : memref<2x40xf32, #tpu.memory_space<vmem>>, vector<2x40xf32>
      tpu.vector_store %arg7[%c0_18, %c0_19], %16 {strides = array<i32>} : memref<2x40xf32, #tpu.memory_space<vmem>>, vector<2x40xf32>,
      %cst_20 = arith.constant 0.000000e+00 : f32
      %18 = vector.broadcast %cst_20 : f32 to vector<2x40xf32>
      %c0_21 = arith.constant 0 : index
      %c0_22 = arith.constant 0 : index
      %19 = vector.load %arg8[%c0_21, %c0_22] : memref<2x40xf32, #tpu.memory_space<vmem>>, vector<2x40xf32>
      tpu.vector_store %arg8[%c0_21, %c0_22], %18 {strides = array<i32>} : memref<2x40xf32, #tpu.memory_space<vmem>>, vector<2x40xf32>,
    } else {
    }
    %c0 = arith.constant 0 : index
    %c0_1 = arith.constant 0 : index
    %3 = vector.load %arg7[%c0, %c0_1] : memref<2x40xf32, #tpu.memory_space<vmem>>, vector<2x40xf32>
    %c0_2 = arith.constant 0 : index
    %c0_3 = arith.constant 0 : index
    %c0_4 = arith.constant 0 : index
    %4 = vector.load %arg1[%c0_2, %c0_3, %c0_4] : memref<2x40x256xf32, #tpu.memory_space<vmem>>, vector<2x40x256xf32>
    %cst = arith.constant dense<0.000000e+00> : vector<2x40xf32>
    %5 = vector.multi_reduction <add>, %4, %cst [2] : vector<2x40x256xf32> to vector<2x40xf32>
    %6 = arith.addf %3, %5 : vector<2x40xf32>
    %c0_5 = arith.constant 0 : index
    %c0_6 = arith.constant 0 : index
    %7 = vector.load %arg7[%c0_5, %c0_6] : memref<2x40xf32, #tpu.memory_space<vmem>>, vector<2x40xf32>
    tpu.vector_store %arg7[%c0_5, %c0_6], %6 {strides = array<i32>} : memref<2x40xf32, #tpu.memory_space<vmem>>, vector<2x40xf32>,
    %c0_7 = arith.constant 0 : index
    %c0_8 = arith.constant 0 : index
    %8 = vector.load %arg8[%c0_7, %c0_8] : memref<2x40xf32, #tpu.memory_space<vmem>>, vector<2x40xf32>
    %c0_9 = arith.constant 0 : index
    %c0_10 = arith.constant 0 : index
    %c0_11 = arith.constant 0 : index
    %9 = vector.load %arg2[%c0_9, %c0_10, %c0_11] : memref<2x40x256xf32, #tpu.memory_space<vmem>>, vector<2x40x256xf32>
    %cst_12 = arith.constant dense<0.000000e+00> : vector<2x40xf32>
    %10 = vector.multi_reduction <add>, %9, %cst_12 [2] : vector<2x40x256xf32> to vector<2x40xf32>
    %11 = arith.addf %8, %10 : vector<2x40xf32>
    %c0_13 = arith.constant 0 : index
    %c0_14 = arith.constant 0 : index
    %12 = vector.load %arg8[%c0_13, %c0_14] : memref<2x40xf32, #tpu.memory_space<vmem>>, vector<2x40xf32>
    tpu.vector_store %arg8[%c0_13, %c0_14], %11 {strides = array<i32>} : memref<2x40xf32, #tpu.memory_space<vmem>>, vector<2x40xf32>,
    %c0_i32_15 = arith.constant 0 : i32
    %13 = arith.cmpi eq, %arg0, %c0_i32_15 : i32
    %14 = arith.extui %13 : i1 to i32
    %c0_i32_16 = arith.constant 0 : i32
    %15 = arith.cmpi ne, %14, %c0_i32_16 : i32
    scf.if %15 {
      %c0_17 = arith.constant 0 : index
      %c0_18 = arith.constant 0 : index
      %16 = vector.load %arg7[%c0_17, %c0_18] : memref<2x40xf32, #tpu.memory_space<vmem>>, vector<2x40xf32>
      %cst_19 = arith.constant 3.906250e-03 : f32
      %17 = vector.broadcast %cst_19 : f32 to vector<2x40xf32>
      %18 = arith.mulf %16, %17 : vector<2x40xf32>
      %c0_20 = arith.constant 0 : index
      %c0_21 = arith.constant 0 : index
      %19 = vector.load %arg8[%c0_20, %c0_21] : memref<2x40xf32, #tpu.memory_space<vmem>>, vector<2x40xf32>
      %cst_22 = arith.constant 3.906250e-03 : f32
      %20 = vector.broadcast %cst_22 : f32 to vector<2x40xf32>
      %21 = arith.mulf %19, %20 : vector<2x40xf32>
      %c0_23 = arith.constant 0 : index
      %c0_24 = arith.constant 0 : index
      %22 = vector.load %arg3[%c0_23, %c0_24] : memref<40x40xf32, #tpu.memory_space<vmem>>, vector<40x40xf32>
      %cst_25 = arith.constant dense<0.000000e+00> : vector<2x40xf32>
      %23 = tpu.matmul %18, %22, %cst_25 {dimension_numbers = #tpu.dot_dimension_numbers<[1], [0], [0], [1], [0, 0, 1, 1], [], []>} : vector<2x40xf32>, vector<40x40xf32>, vector<2x40xf32> -> vector<2x40xf32>
      %c0_26 = arith.constant 0 : index
      %c0_27 = arith.constant 0 : index
      %24 = vector.load %arg4[%c0_26, %c0_27] : memref<40x40xf32, #tpu.memory_space<vmem>>, vector<40x40xf32>
      %cst_28 = arith.constant dense<0.000000e+00> : vector<2x40xf32>
      %25 = tpu.matmul %21, %24, %cst_28 {dimension_numbers = #tpu.dot_dimension_numbers<[1], [0], [0], [1], [0, 0, 1, 1], [], []>} : vector<2x40xf32>, vector<40x40xf32>, vector<2x40xf32> -> vector<2x40xf32>
      %26 = arith.addf %23, %25 : vector<2x40xf32>
      %c0_29 = arith.constant 0 : index
      %c0_30 = arith.constant 0 : index
      %27 = vector.load %arg5[%c0_29, %c0_30] : memref<40x40xf32, #tpu.memory_space<vmem>>, vector<40x40xf32>
      %cst_31 = arith.constant dense<0.000000e+00> : vector<2x40xf32>
      %28 = tpu.matmul %26, %27, %cst_31 {dimension_numbers = #tpu.dot_dimension_numbers<[1], [0], [0], [1], [0, 0, 1, 1], [], []>} : vector<2x40xf32>, vector<40x40xf32>, vector<2x40xf32> -> vector<2x40xf32>
      %cst_32 = arith.constant 0.000000e+00 : f32
      %29 = vector.broadcast %cst_32 : f32 to vector<2x40xf32>
      %30 = arith.maximumf %28, %29 : vector<2x40xf32>
      %31 = vector.shape_cast %30 : vector<2x40xf32> to vector<2x40x1xf32>
      %32 = vector.shape_cast %30 : vector<2x40xf32> to vector<2x1x40xf32>
      %33 = vector.broadcast %31 : vector<2x40x1xf32> to vector<2x40x40xf32>
      %34 = vector.broadcast %32 : vector<2x1x40xf32> to vector<2x40x40xf32>
      %35 = arith.mulf %33, %34 : vector<2x40x40xf32>
      %cst_33 = arith.constant dense<0xFF800000> : vector<40x40xf32>
      %36 = vector.multi_reduction <maximumf>, %35, %cst_33 [0] : vector<2x40x40xf32> to vector<40x40xf32>
      %37 = vector.shape_cast %36 : vector<40x40xf32> to vector<1x40x40xf32>
      %38 = vector.broadcast %37 : vector<1x40x40xf32> to vector<2x40x40xf32>
      %39 = arith.subf %35, %38 : vector<2x40x40xf32>
      %40 = math.exp %39 : vector<2x40x40xf32>
      %cst_34 = arith.constant dense<0.000000e+00> : vector<40x40xf32>
      %41 = vector.multi_reduction <add>, %40, %cst_34 [0] : vector<2x40x40xf32> to vector<40x40xf32>
      %42 = vector.shape_cast %41 : vector<40x40xf32> to vector<1x40x40xf32>
      %43 = vector.broadcast %42 : vector<1x40x40xf32> to vector<2x40x40xf32>
      %44 = arith.divf %40, %43 : vector<2x40x40xf32>
      %45 = vector.shape_cast %30 : vector<2x40xf32> to vector<2x1x40xf32>
      %46 = vector.broadcast %45 : vector<2x1x40xf32> to vector<2x40x40xf32>
      %47 = arith.mulf %44, %46 : vector<2x40x40xf32>
      %cst_35 = arith.constant dense<0.000000e+00> : vector<2x40xf32>
      %48 = vector.multi_reduction <add>, %47, %cst_35 [2] : vector<2x40x40xf32> to vector<2x40xf32>
      %c0_36 = arith.constant 0 : index
      %c0_37 = arith.constant 0 : index
      %49 = vector.load %arg6[%c0_36, %c0_37] : memref<2x40xf32, #tpu.memory_space<vmem>>, vector<2x40xf32>
      tpu.vector_store %arg6[%c0_36, %c0_37], %48 {strides = array<i32>} : memref<2x40xf32, #tpu.memory_space<vmem>>, vector<2x40xf32>,
    } else {
    }
    return
  }
  func.func @transform_0(%arg0: i32) -> (i32, i32, i32) {
    %c0_i32 = arith.constant 0 : i32
    %c0_i32_0 = arith.constant 0 : i32
    %c0_i32_1 = arith.constant 0 : i32
    return %c0_i32, %c0_i32_0, %arg0 : i32, i32, i32
  }
  func.func @transform_1(%arg0: i32) -> (i32, i32, i32) {
    %c0_i32 = arith.constant 0 : i32
    %c0_i32_0 = arith.constant 0 : i32
    %c0_i32_1 = arith.constant 0 : i32
    return %c0_i32, %c0_i32_0, %arg0 : i32, i32, i32
  }
  func.func @transform_2(%arg0: i32) -> (i32, i32) {
    %c0_i32 = arith.constant 0 : i32
    %c0_i32_0 = arith.constant 0 : i32
    %c0_i32_1 = arith.constant 0 : i32
    return %c0_i32, %c0_i32_0 : i32, i32
  }
  func.func @transform_3(%arg0: i32) -> (i32, i32) {
    %c0_i32 = arith.constant 0 : i32
    %c0_i32_0 = arith.constant 0 : i32
    %c0_i32_1 = arith.constant 0 : i32
    return %c0_i32, %c0_i32_0 : i32, i32
  }
  func.func @transform_4(%arg0: i32) -> (i32, i32) {
    %c0_i32 = arith.constant 0 : i32
    %c0_i32_0 = arith.constant 0 : i32
    %c0_i32_1 = arith.constant 0 : i32
    return %c0_i32, %c0_i32_0 : i32, i32
  }
  func.func @transform_5(%arg0: i32) -> (i32, i32) {
    %c0_i32 = arith.constant 0 : i32
    %c0_i32_0 = arith.constant 0 : i32
    %c0_i32_1 = arith.constant 0 : i32
    return %c0_i32, %c0_i32_0 : i32, i32
  }
}

module attributes {stable_mosaic.version = 11 : i64} {
  func.func @_output_kernel(%arg0: i32, %arg1: i32, %arg2: memref<1x40x256xf32, #tpu.memory_space<vmem>>, %arg3: memref<40x40xf32, #tpu.memory_space<vmem>>, %arg4: memref<1x40x1xf32, #tpu.memory_space<vmem>>, %arg5: memref<1x40x256xf32, #tpu.memory_space<vmem>>) attributes {dimension_semantics = [#tpu.dimension_semantics<parallel>, #tpu.dimension_semantics<parallel>], iteration_bounds = array<i64: 2, 1>, scalar_prefetch = 0 : i64, scratch_operands = 0 : i64, tpu.core_type = #tpu.core_type<tc>, window_params = [{transform_indices = @transform_0, window_bounds = array<i64: 1, 40, 256>}, {pipeline_mode = #tpu.pipeline_mode<synchronous>, transform_indices = @transform_1, window_bounds = array<i64: 40, 40>}, {transform_indices = @transform_2, window_bounds = array<i64: 1, 40, 1>}, {transform_indices = @transform_3, window_bounds = array<i64: 1, 40, 256>}]} {
    %c0 = arith.constant 0 : index
    %c0_0 = arith.constant 0 : index
    %c0_1 = arith.constant 0 : index
    %0 = vector.load %arg2[%c0, %c0_0, %c0_1] : memref<1x40x256xf32, #tpu.memory_space<vmem>>, vector<1x40x256xf32>
    %1 = vector.shape_cast %0 : vector<1x40x256xf32> to vector<40x256xf32>
    %c0_2 = arith.constant 0 : index
    %c0_3 = arith.constant 0 : index
    %2 = vector.load %arg3[%c0_2, %c0_3] : memref<40x40xf32, #tpu.memory_space<vmem>>, vector<40x40xf32>
    %cst = arith.constant dense<0.000000e+00> : vector<40x256xf32>
    %3 = tpu.matmul %2, %1, %cst {dimension_numbers = #tpu.dot_dimension_numbers<[1], [0], [0], [1], [0, 0, 1, 1], [], []>} : vector<40x40xf32>, vector<40x256xf32>, vector<40x256xf32> -> vector<40x256xf32>
    %c0_4 = arith.constant 0 : index
    %c0_5 = arith.constant 0 : index
    %c0_6 = arith.constant 0 : index
    %4 = vector.load %arg4[%c0_4, %c0_5, %c0_6] : memref<1x40x1xf32, #tpu.memory_space<vmem>>, vector<1x40x1xf32>
    %5 = vector.shape_cast %4 : vector<1x40x1xf32> to vector<40x1xf32>
    %6 = vector.broadcast %5 : vector<40x1xf32> to vector<40x256xf32>
    %7 = arith.mulf %3, %6 : vector<40x256xf32>
    %8 = arith.addf %7, %1 : vector<40x256xf32>
    %9 = vector.shape_cast %8 : vector<40x256xf32> to vector<1x40x256xf32>
    %c0_7 = arith.constant 0 : index
    %c0_8 = arith.constant 0 : index
    %c0_9 = arith.constant 0 : index
    %10 = vector.load %arg5[%c0_7, %c0_8, %c0_9] : memref<1x40x256xf32, #tpu.memory_space<vmem>>, vector<1x40x256xf32>
    tpu.vector_store %arg5[%c0_7, %c0_8, %c0_9], %9 {strides = array<i32>} : memref<1x40x256xf32, #tpu.memory_space<vmem>>, vector<1x40x256xf32>,
    return
  }
  func.func @transform_0(%arg0: i32, %arg1: i32) -> (i32, i32, i32) {
    %c0_i32 = arith.constant 0 : i32
    %c0_i32_0 = arith.constant 0 : i32
    return %arg0, %c0_i32, %arg1 : i32, i32, i32
  }
  func.func @transform_1(%arg0: i32, %arg1: i32) -> (i32, i32) {
    %c0_i32 = arith.constant 0 : i32
    %c0_i32_0 = arith.constant 0 : i32
    %c0_i32_1 = arith.constant 0 : i32
    return %c0_i32, %c0_i32_0 : i32, i32
  }
  func.func @transform_2(%arg0: i32, %arg1: i32) -> (i32, i32, i32) {
    %c0_i32 = arith.constant 0 : i32
    %c0_i32_0 = arith.constant 0 : i32
    %c0_i32_1 = arith.constant 0 : i32
    return %arg0, %c0_i32, %c0_i32_0 : i32, i32, i32
  }
  func.func @transform_3(%arg0: i32, %arg1: i32) -> (i32, i32, i32) {
    %c0_i32 = arith.constant 0 : i32
    %c0_i32_0 = arith.constant 0 : i32
    return %arg0, %c0_i32, %arg1 : i32, i32, i32
  }
}

</mosaic_0001>

<bundles_post_ra>
// kernel: pla_forward.3
= control target key start
LH: loop header
LB: loop body
LE: loop exit
PB: predicated region body
PF: predicated region fallthrough
CT: control target
= control target key end

     0   :  { %s620_s12 = smov 0   ;;  %s622_s13 = smov 0   ;;  %s740_s0 = inlined_call_operand.vmem [shape: f32[2,40,256], index: 0, kind: input, shape index: {}, may-alias: {0,3}]   ;;  %s741_s1 = inlined_call_operand.vmem [shape: f32[40,40], index: 1, kind: input, shape index: {}]   ;;  %s742_s2 = inlined_call_operand.vmem [shape: f32[2,40,1], index: 2, kind: input, shape index: {}]   ;;  %s743_s3 = inlined_call_operand.vmem [shape: f32[2,40,256], index: 3, kind: output, shape index: {}, may-alias: {0,3}]  }
   0x1   :  { %s624_s14 = smov 0  }
   0x2 LB: > { %s25_s15 = sadd.s32 1, %s592_s13  ;;  %p519_p0 = scmp.ge.s32.totalorder %s596_s14, 1  ;;  %s596_s14 = sphi %s624_s14, %s13_s14   ;;  %s592_s13 = sphi %s622_s13, %s745_s13   ;;  %s588_s12 = sphi %s620_s12, %s744_s12  }
   0x3   : > { %p27_p1 = scmp.ge.s32.totalorder %s25_s15, 2  ;;  %p168_p2 = scmp.lt.s32.totalorder %s596_s14, 3 }
   0x5   : > { %s747_s15 = smov (%p27_p1, %s25_s15), 0  ;;  %p169_p3 = pnand %p519_p0, %p168_p2 }
   0x6   : > { %p206_p4 = scmp.lt.s32.totalorder (!%p169_p3), %s588_s12, 1  ;;  %v598_v0 = vmov (!%p169_p3), 0.0   ;;  %v599_v1 = vmov (!%p169_p3), 0   ;;  %v240_v20 = vld [vmem:[%s741_s1] sm:$0xff] (!%p169_p3)  ;;  %vm245_vm0 = vcmask (!%p169_p3), 326656   ;;  %v243_v21 = vld [vmem:[%s741_s1 + $0x18] sm:$0xff] (!%p169_p3) }
   0x7   : > { %172 = sbr.rel (%p169_p3) target bundleno = 257 (0x101), region = 32  ;;  %325 = vmatprep.mubr.f32.mxu0 (!%p169_p3), %v598_v0  ;;  %343 = vmatprep.mubr.f32.mxu1 (!%p169_p3), %v598_v0  ;;  %v241_v23 = vld [vmem:[%s741_s1 + $0x8] sm:$0xff] (!%p169_p3)  ;;  %v244_v24 = vld [vmem:[%s741_s1 + $0x20] sm:$0xff] (!%p169_p3)  ;;  %v242_v25 = vld [vmem:[%s741_s1 + $0x10] sm:$0xff] (!%p169_p3) }
   0x8   : > { %572 = vset.pattern.permute.xlu0 (!%p169_p3), %v599_v1  ;;  %573 = vset.pattern.permute.xlu1 (!%p169_p3), %v599_v1 }
   0xe   : > { %s749_s12 = smov (!%p206_p4, %s588_s12), 1 }
   0xf   : > { %s544_s16 = smul.u32 80, %s749_s12 }
  0x10   : > { %s545_s17 = smul.u32 40, %s749_s12 }
  0x11   : > { %s647_s20 = scalar_lea.vmem %s740_s0, %s544_s16  ;;  %s713_s9 = scalar_lea.vmem %s743_s3, %s544_s16 }
  0x12   : > { %v650_v2 = vld [vmem:[%s647_s20 + $0x8] sm:$0xff]  ;;  %v653_v3 = vld [vmem:[%s647_s20 + $0x18] sm:$0xff]  ;;  %v230_v4 = vld [vmem:[%s647_s20] sm:$0xff]  ;;  %s659_s23 = scalar_lea.vmem %s742_s2, %s545_s17 }
  0x13   : > { %v530_v5 = vpack.c.bf16 %v653_v3, %v650_v2  ;;  %v664_v6 = vld [vmem:[%s647_s20 + $0x10] sm:$0xff]  ;;  %v667_v7 = vld [vmem:[%s647_s20 + $0x28] sm:$0xff]  ;;  %v237_v8 = vld [vmem:[%s647_s20 + $0x38] sm:$0xff] }
  0x14   : > { %v532_v9 = vpack.c.bf16 %v664_v6, %v230_v4  ;;  %v534_v10 = vpack.c.bf16 %v237_v8, %v667_v7  ;;  %v673_v11 = vld [vmem:[%s647_s20 + $0x20] sm:$0xff]  ;;  %v236_v12 = vld [vmem:[%s647_s20 + $0x30] sm:$0xff]  ;;  %v680_v16 = vld [vmem:[%s647_s20 + $0x48] sm:$0xff] }
  0x15   : > { %531 = vmatprep.subr.bf16.mxu0 %v530_v5  ;;  %538 = vmatprep.subr.bf16.mxu1 %v530_v5  ;;  %v356_v13 = vld [vmem:[%s659_s23] sm:$0xff]  ;;  %v536_v14 = vpack.c.bf16 %v236_v12, %v673_v11  ;;  %v358_v15 = vld [vmem:[%s659_s23 + $0x10] sm:$0xff]  ;;  %v357_v17 = vld [vmem:[%s659_s23 + $0x8] sm:$0xff] }
  0x16   : > { %533 = vmatpush1.bf16.msra.mxu0 %v532_v9  ;;  %541 = vmatpush1.bf16.msra.mxu1 %v532_v9  ;;  %v359_v18 = vld [vmem:[%s659_s23 + $0x18] sm:$0xff]  ;;  %v238_v19 = vld [vmem:[%s647_s20 + $0x40] sm:$0xff] }
  0x17   : > { %535 = vmatprep.subr.bf16.mxu0 %v534_v10  ;;  %539 = vmatprep.subr.bf16.mxu1 %v534_v10  ;;  %v360_v22 = vld [vmem:[%s659_s23 + $0x20] sm:$0xff] }
  0x18   : > { %363 = vperm.xlu0 %572, %v356_v13   ;;  %373 = vperm.xlu1 %573, %v358_v15  }
  0x1a   : > { %537 = vmatpush1.bf16.msra.mxu0 %v536_v14  ;;  %542 = vmatpush1.bf16.msra.mxu1 %v536_v14 }
  0x1b   : > { %269 = vmatprep.subr.mxu0 %v680_v16  ;;  %540 = vmatprep.subr.mxu1 %v680_v16 }
  0x1c   : > { %368 = vperm.xlu0 %572, %v357_v17   ;;  %378 = vperm.xlu1 %573, %v359_v18  }
  0x1e   : > { %270 = vmatpush1.msra.mxu0 %v238_v19  ;;  %543 = vmatpush1.msra.mxu1 %v238_v19 }
  0x1f   : > { %523 = vmatmul.mubr.msk.f32.vlgmr.msra.gmra.mrb[0].mxu0 %vm245_vm0, %v240_v20  ;;  %526 = vmatmul.mubr.msk.f32.vlgmr.msra.gmra.mrb[0].mxu1 %vm245_vm0, %v243_v21 }
  0x20   : > { %331 = vmatprep.mubr.f32.mxu0 %v598_v0  ;;  %349 = vmatprep.mubr.f32.mxu1 %v598_v0 }
  0x21   : > { %383 = vperm.xlu0 %572, %v360_v22  }
  0x23   : > { %524 = vmatmul.mubr.msk.f32.gmra.mrb[2].mxu0 %vm245_vm0, %v241_v23  ;;  %527 = vmatmul.mubr.msk.f32.gmra.mrb[2].mxu1 %vm245_vm0, %v244_v24 }
  0x24   : > { %337 = vmatprep.mubr.f32.mxu0 %v598_v0 }
  0x27   : > { %525 = vmatmul.mubr.msk.f32.gmra.mrb[4].mxu0 %vm245_vm0, %v242_v25 }
  0x97   : > { %v364_v26 = vpop.permute.xlu0 %363  ;;  %v374_v27 = vpop.permute.xlu1 %373 }
  0x9b   : > { %v369_v28 = vpop.permute.xlu0 %368  ;;  %v379_v29 = vpop.permute.xlu1 %378 }
  0xa0   : > { %v384_v39 = vpop.permute.xlu0 %383 }
  0xf2   : > { %v327_v30 = vpop.f32.mrb[0].mxu0  ;;  %v345_v31 = vpop.f32.mrb[0].mxu1 }
  0xf3   : > { %v386_v32 = vmul.f32 %v364_v26, %v327_v30  ;;  %v329_v33 = vpop.f32.mrb[1].mxu0  ;;  %v347_v34 = vpop.f32.mrb[1].mxu1  ;;  %v392_v35 = vmul.f32 %v379_v29, %v345_v31 }
  0xf4   : > { %v387_v36 = vmul.f32 %v364_v26, %v329_v33  ;;  %v393_v37 = vmul.f32 %v379_v29, %v347_v34 }
  0xf5   : > { %v396_v38 = vadd.f32 %v386_v32, %v230_v4  ;;  %v402_v40 = vadd.f32 %v392_v35, %v236_v12 }
  0xf6   : > { %v397_v41 = vadd.f32 %v387_v36, %v650_v2  ;;  %v403_v42 = vadd.f32 %v393_v37, %v237_v8  ;;  %v333_v43 = vpop.f32.mrb[2].mxu0  ;;  %v351_v44 = vpop.f32.mrb[2].mxu1 }
  0xf7   : > { %406 = vst [vmem:[%s713_s9] sm:$0xff] %v396_v38  ;;  %412 = vst [vmem:[%s713_s9 + $0x30] sm:$0xff] %v402_v40  ;;  %v388_v45 = vmul.f32 %v369_v28, %v333_v43  ;;  %v394_v46 = vmul.f32 %v384_v39, %v351_v44  ;;  %v335_v47 = vpop.f32.mrb[3].mxu0  ;;  %v353_v48 = vpop.f32.mrb[3].mxu1 }
  0xf8   : > { %407 = vst [vmem:[%s713_s9 + $0x8] sm:$0xff] %v397_v41  ;;  %413 = vst [vmem:[%s713_s9 + $0x38] sm:$0xff] %v403_v42  ;;  %v389_v49 = vmul.f32 %v369_v28, %v335_v47  ;;  %v395_v50 = vmul.f32 %v384_v39, %v353_v48 }
  0xf9   : > { %v398_v51 = vadd.f32 %v388_v45, %v664_v6  ;;  %v404_v52 = vadd.f32 %v394_v46, %v238_v19 }
  0xfa   : > { %v399_v53 = vadd.f32 %v389_v49, %v653_v3  ;;  %v405_v54 = vadd.f32 %v395_v50, %v680_v16  ;;  %v339_v55 = vpop.f32.mrb[4].mxu0 }
  0xfb   : > { %408 = vst [vmem:[%s713_s9 + $0x10] sm:$0xff] %v398_v51  ;;  %414 = vst [vmem:[%s713_s9 + $0x40] sm:$0xff] %v404_v52  ;;  %v390_v56 = vmul.f32 %v374_v27, %v339_v55  ;;  %v341_v57 = vpop.f32.mrb[5].mxu0 }
  0xfc   : > { %409 = vst [vmem:[%s713_s9 + $0x18] sm:$0xff] %v399_v53  ;;  %415 = vst [vmem:[%s713_s9 + $0x48] sm:$0xff] %v405_v54  ;;  %v391_v58 = vmul.f32 %v374_v27, %v341_v57 }
  0xfd   : > { %v400_v59 = vadd.f32 %v390_v56, %v673_v11 }
  0xfe   : > { %v401_v60 = vadd.f32 %v391_v58, %v667_v7 }
  0xff   : > { %410 = vst [vmem:[%s713_s9 + $0x20] sm:$0xff] %v400_v59 }
 0x100   : > { %411 = vst [vmem:[%s713_s9 + $0x28] sm:$0xff] %v401_v60 }
 0x101 PF: > { %s13_s14 = sadd.s32 1, %s596_s14   ;;  %s744_s12 = smov %s592_s13 }
 0x102   : > { %p10_p5 = scmp.ge.s32.totalorder %s13_s14, 4   ;;  %s745_s13 = smov %s747_s15 }
 0x104   :  { %12 = sbr.rel (!%p10_p5) target bundleno = 2 (0x2), region = 65 }

// kernel: pla_forward.2
= control target key start
LH: loop header
LB: loop body
LE: loop exit
PB: predicated region body
PF: predicated region fallthrough
CT: control target
= control target key end

     0   :  { %vm24_vm0 = vcmask 320512   ;;  %v891_v52 = vmov 0.0   ;;  %vm893_vm1 = vmmov 0   ;;  %vm99_vm2 = vcmask 130112   ;;  %s1249_s1 = inlined_call_operand.vmem [shape: f32[2,40,256], index: 1, kind: input, shape index: {}]   ;;  %s1250_s0 = inlined_call_operand.vmem [shape: f32[2,40,256], index: 0, kind: input, shape index: {}]   ;;  %s1251_s3 = inlined_call_operand.vmem [shape: f32[40,40], index: 3, kind: input, shape index: {}]   ;;  %s1252_s4 = inlined_call_operand.vmem [shape: f32[40,40], index: 4, kind: input, shape index: {}]   ;;  %s1253_s2 = inlined_call_operand.vmem [shape: f32[40,40], index: 2, kind: input, shape index: {}]   ;;  %s1254_s5 = inlined_call_operand.vmem [shape: f32[2,40], index: 5, kind: output, shape index: {}]  }
   0x1   :  { %v163_v0 = vld [vmem:[%s1249_s1 + $0x50] sm:$0xff]  ;;  %v164_v1 = vld [vmem:[%s1249_s1 + $0x58] sm:$0xff]  ;;  %v153_v2 = vld [vmem:[%s1249_s1] sm:$0xff]  ;;  %26 = vst.msk [vmem:[#allocation3] sm:$0x3] %vm24_vm0, %v891_v52  ;;  %808 = vmatprep.mubr.msk.f32.mxu0 %vm893_vm1, %v891_v52  ;;  %834 = vmatprep.mubr.msk.f32.mxu1 %vm893_vm1, %v891_v52  ;;  %vm106_vm3 = vcmask 195712  }
   0x2   :  { %v188_v3 = vadd.f32 %v164_v1, %v163_v0  ;;  %v154_v4 = vld [vmem:[%s1249_s1 + $0x8] sm:$0xff]  ;;  %v165_v5 = vld [vmem:[%s1249_s1 + $0x60] sm:$0xff]  ;;  %v155_v8 = vld [vmem:[%s1249_s1 + $0x10] sm:$0xff]  ;;  %25 = vst.msk [vmem:[#allocation2] sm:$0x3] %vm24_vm0, %v891_v52  ;;  %v892_v0 = vmov 0.0|0.0  }
   0x3   :  { %v166_v6 = vld [vmem:[%s1249_s1 + $0x68] sm:$0xff]  ;;  %v173_v7 = vadd.f32 %v154_v4, %v153_v2  ;;  %v156_v9 = vld [vmem:[%s1249_s1 + $0x18] sm:$0xff]  ;;  %v167_v12 = vld [vmem:[%s1249_s1 + $0x70] sm:$0xff]  ;;  %837 = vmatprep.subr.bf16.mxu0 %v892_v0  ;;  %849 = vmatprep.subr.bf16.mxu1 %v892_v0  ;;  %vm113_vm4 = vcmask 261312   ;;  %vm120_vm5 = vcmask 326912   ;;  %vm146_vm6 = vcmask 1041409  }
   0x4   :  { %189 = vadd.xlane.f32.xlu1 %v188_v3  ;;  %v191_v10 = vadd.f32 %v166_v6, %v165_v5  ;;  %v176_v11 = vadd.f32 %v156_v9, %v155_v8  ;;  %v168_v13 = vld [vmem:[%s1249_s1 + $0x78] sm:$0xff]  ;;  %v157_v14 = vld [vmem:[%s1249_s1 + $0x20] sm:$0xff]  ;;  %v158_v15 = vld [vmem:[%s1249_s1 + $0x28] sm:$0xff]  ;;  %vm282_vm7 = vcmask 326656  }
   0x5   :  { %174 = vadd.xlane.f32.xlu0 %v173_v7  ;;  %v194_v16 = vadd.f32 %v168_v13, %v167_v12  ;;  %v179_v17 = vadd.f32 %v158_v15, %v157_v14  ;;  %v169_v18 = vld [vmem:[%s1249_s1 + $0x80] sm:$0xff]  ;;  %v170_v19 = vld [vmem:[%s1249_s1 + $0x88] sm:$0xff]  ;;  %v159_v20 = vld [vmem:[%s1249_s1 + $0x30] sm:$0xff] }
   0x6   :  { %v160_v21 = vld [vmem:[%s1249_s1 + $0x38] sm:$0xff]  ;;  %v197_v22 = vadd.f32 %v170_v19, %v169_v18  ;;  %v171_v24 = vld [vmem:[%s1249_s1 + $0x90] sm:$0xff]  ;;  %v161_v26 = vld [vmem:[%s1249_s1 + $0x40] sm:$0xff] }
   0x7   :  { %v182_v23 = vadd.f32 %v160_v21, %v159_v20  ;;  %v172_v25 = vld [vmem:[%s1249_s1 + $0x98] sm:$0xff]  ;;  %v162_v27 = vld [vmem:[%s1249_s1 + $0x48] sm:$0xff]  ;;  %v30_v30 = vld [vmem:[%s1250_s0 + $0x10] sm:$0xff] }
   0x8   :  { %192 = vadd.xlane.f32.xlu1 %v191_v10  ;;  %v200_v28 = vadd.f32 %v172_v25, %v171_v24  ;;  %v185_v29 = vadd.f32 %v162_v27, %v161_v26  ;;  %v31_v31 = vld [vmem:[%s1250_s0 + $0x18] sm:$0xff]  ;;  %v28_v32 = vld [vmem:[%s1250_s0] sm:$0xff]  ;;  %v29_v33 = vld [vmem:[%s1250_s0 + $0x8] sm:$0xff] }
   0x9   :  { %177 = vadd.xlane.f32.xlu0 %v176_v11  ;;  %v51_v34 = vadd.f32 %v31_v31, %v30_v30  ;;  %v48_v35 = vadd.f32 %v29_v33, %v28_v32  ;;  %v40_v36 = vld [vmem:[%s1250_s0 + $0x60] sm:$0xff]  ;;  %v41_v37 = vld [vmem:[%s1250_s0 + $0x68] sm:$0xff]  ;;  %v38_v38 = vld [vmem:[%s1250_s0 + $0x50] sm:$0xff]  ;;  %v88_v11 = vlaneseq }
   0xa   :  { %v39_v39 = vld [vmem:[%s1250_s0 + $0x58] sm:$0xff]  ;;  %v66_v40 = vadd.f32 %v41_v37, %v40_v36  ;;  %v42_v42 = vld [vmem:[%s1250_s0 + $0x70] sm:$0xff]  ;;  %v32_v44 = vld [vmem:[%s1250_s0 + $0x20] sm:$0xff] }
   0xb   :  { %v63_v41 = vadd.f32 %v39_v39, %v38_v38  ;;  %v43_v43 = vld [vmem:[%s1250_s0 + $0x78] sm:$0xff]  ;;  %v33_v45 = vld [vmem:[%s1250_s0 + $0x28] sm:$0xff]  ;;  %v44_v48 = vld [vmem:[%s1250_s0 + $0x80] sm:$0xff]  ;;  %v89_v14 = vand.u32 127, %v88_v11  ;;  %v1087_v19 = vshrl.u32 %v88_v11, 7 }
   0xc   :  { %195 = vadd.xlane.f32.xlu1 %v194_v16  ;;  %v69_v46 = vadd.f32 %v43_v43, %v42_v42  ;;  %v54_v47 = vadd.f32 %v33_v45, %v32_v44  ;;  %v45_v49 = vld [vmem:[%s1250_s0 + $0x88] sm:$0xff]  ;;  %v34_v50 = vld [vmem:[%s1250_s0 + $0x30] sm:$0xff]  ;;  %v35_v51 = vld [vmem:[%s1250_s0 + $0x38] sm:$0xff] }
   0xd   :  { %180 = vadd.xlane.f32.xlu0 %v179_v17  ;;  %v72_v53 = vadd.f32 %v45_v49, %v44_v48  ;;  %v57_v54 = vadd.f32 %v35_v51, %v34_v50  ;;  %v46_v55 = vld [vmem:[%s1250_s0 + $0x90] sm:$0xff]  ;;  %v47_v56 = vld [vmem:[%s1250_s0 + $0x98] sm:$0xff]  ;;  %v36_v57 = vld [vmem:[%s1250_s0 + $0x40] sm:$0xff]  ;;  %v94_v15 = vadd.s32 4294967288, %v89_v14  ;;  %v101_v18 = vadd.s32 4294967280, %v89_v14 }
   0xe   :  { %v37_v58 = vld [vmem:[%s1250_s0 + $0x48] sm:$0xff]  ;;  %v75_v59 = vadd.f32 %v47_v56, %v46_v55  ;;  %v277_v61 = vld [vmem:[%s1251_s3] sm:$0xff]  ;;  %v279_v1 = vld [vmem:[%s1251_s3 + $0x10] sm:$0xff]  ;;  %v108_v20 = vadd.s32 4294967272, %v89_v14  ;;  %v115_v25 = vadd.s32 4294967264, %v89_v14  ;;  %v1096_v26 = vsub.s32 %v89_v14, %v1087_v19 }
   0xf   :  { %v60_v60 = vadd.f32 %v37_v58, %v36_v57  ;;  %v278_v62 = vld [vmem:[%s1251_s3 + $0x8] sm:$0xff]  ;;  %v280_v2 = vld [vmem:[%s1251_s3 + $0x18] sm:$0xff]  ;;  %v281_v4 = vld [vmem:[%s1251_s3 + $0x20] sm:$0xff]  ;;  %v1090_v21 = vsub.s32 %v94_v15, %v1087_v19 }
  0x10   :  { %198 = vadd.xlane.f32.xlu1 %v197_v22  ;;  %v838_v63 = vpack.c.bf16 %v278_v62, %v277_v61  ;;  %v841_v3 = vpack.c.bf16 %v280_v2, %v279_v1  ;;  %v429_v5 = vld [vmem:[%s1252_s4] sm:$0xff]  ;;  %v430_v6 = vld [vmem:[%s1252_s4 + $0x8] sm:$0xff]  ;;  %v431_v7 = vld [vmem:[%s1252_s4 + $0x10] sm:$0xff]  ;;  %v1099_v27 = vsub.s32 %v108_v20, %v1087_v19  ;;  %v1105_v33 = vsub.s32 %v115_v25, %v1087_v19 }
  0x11   :  { %183 = vadd.xlane.f32.xlu0 %v182_v23  ;;  %v850_v8 = vpack.c.bf16 %v430_v6, %v429_v5  ;;  %v432_v9 = vld [vmem:[%s1252_s4 + $0x18] sm:$0xff]  ;;  %v1093_v23 = vsub.s32 %v101_v18, %v1087_v19  ;;  %v152_v50 = vld [vmem:[#allocation3] sm:$0x3]  ;;  %v273_v61 = vld [vmem:[%s1253_s2 + $0x8] sm:$0xff] }
  0x12   :  { %839 = vmatpush3.bf16.msra.mxu0 %v838_v63  ;;  %v853_v10 = vpack.c.bf16 %v432_v9, %v431_v7  ;;  %v274_v6 = vld [vmem:[%s1253_s2 + $0x10] sm:$0xff]  ;;  %v275_v7 = vld [vmem:[%s1253_s2 + $0x18] sm:$0xff] }
  0x13   :  { %840 = vmatprep.subr.bf16.mxu0 %v892_v0  ;;  %851 = vmatpush3.bf16.msra.mxu1 %v850_v8  ;;  %v847_v15 = vpack.c.bf16 %v275_v7, %v274_v6 }
  0x14   :  { %201 = vadd.xlane.f32.xlu1 %v200_v28  ;;  %852 = vmatprep.subr.bf16.mxu1 %v892_v0 }
  0x15   :  { %186 = vadd.xlane.f32.xlu0 %v185_v29 }
  0x16   :  { %842 = vmatpush3.bf16.msra.mxu0 %v841_v3 }
  0x17   :  { %806 = vmatprep.subr.mxu0 %v891_v52  ;;  %854 = vmatpush3.bf16.msra.mxu1 %v853_v10 }
  0x18   :  { %52 = vadd.xlane.f32.xlu1 %v51_v34  ;;  %832 = vmatprep.subr.mxu1 %v891_v52 }
  0x19   :  { %49 = vadd.xlane.f32.xlu0 %v48_v35 }
  0x1a   :  { %807 = vmatpush3.msra.mxu0 %v281_v4 }
  0x1b   :  { %843 = vmatprep.subr.bf16.mxu0 %v892_v0 }
  0x1c   :  { %67 = vadd.xlane.f32.xlu1 %v66_v40 }
  0x1d   :  { %64 = vadd.xlane.f32.xlu0 %v63_v41 }
  0x20   :  { %70 = vadd.xlane.f32.xlu1 %v69_v46 }
  0x21   :  { %55 = vadd.xlane.f32.xlu0 %v54_v47 }
  0x24   :  { %73 = vadd.xlane.f32.xlu1 %v72_v53 }
  0x25   :  { %58 = vadd.xlane.f32.xlu0 %v57_v54 }
  0x28   :  { %76 = vadd.xlane.f32.xlu1 %v75_v59 }
  0x29   :  { %61 = vadd.xlane.f32.xlu0 %v60_v60  ;;  %v272_v60 = vld [vmem:[%s1253_s2] sm:$0xff] }
  0x2a   :  { %v844_v1 = vpack.c.bf16 %v273_v61, %v272_v60 }
  0x91   :  { %v190_v12 = vpop.xlane.xlu1 %189 }
  0x92   :  { %v175_v13 = vpop.xlane.xlu0 %174  ;;  %v240_v34 = vrot.slane %v190_v12, %v1096_v26 }
  0x93   :  { %v216_v37 = vrot.slane %v175_v13, %v1096_v26 }
  0x95   :  { %v193_v16 = vpop.xlane.xlu1 %192 }
  0x96   :  { %v178_v17 = vpop.xlane.xlu0 %177  ;;  %v244_v28 = vrot.slane %v193_v16, %v1090_v21 }
  0x97   :  { %v220_v30 = vrot.slane %v178_v17, %v1090_v21 }
  0x98   :  { %v245_v39 = vsel %vm99_vm2, %v244_v28, %v240_v34  ;;  %v276_v34 = vld [vmem:[%s1253_s2 + $0x20] sm:$0xff] }
  0x99   :  { %v196_v22 = vpop.xlane.xlu1 %195  ;;  %v221_v41 = vsel %vm99_vm2, %v220_v30, %v216_v37 }
  0x9a   :  { %v181_v24 = vpop.xlane.xlu0 %180  ;;  %v249_v31 = vrot.slane %v196_v22, %v1093_v23 }
  0x9b   :  { %v225_v35 = vrot.slane %v181_v24, %v1093_v23 }
  0x9c   :  { %v250_v42 = vsel %vm106_vm3, %v249_v31, %v245_v39  ;;  %v433_v39 = vld [vmem:[%s1252_s4 + $0x20] sm:$0xff] }
  0x9d   :  { %v199_v29 = vpop.xlane.xlu1 %198  ;;  %v226_v45 = vsel %vm106_vm3, %v225_v35, %v221_v41  ;;  %833 = vmatpush3.msra.mxu1 %v433_v39  ;;  %v894_v41 = vmov 1966171168  }
  0x9e   :  { %v184_v32 = vpop.xlane.xlu0 %183  ;;  %v254_v36 = vrot.slane %v199_v29, %v1099_v27 }
  0x9f   :  { %v230_v38 = vrot.slane %v184_v32, %v1099_v27  ;;  %v27_v32 = vld [vmem:[#allocation2] sm:$0x3] }
  0xa0   :  { %v255_v46 = vsel %vm113_vm4, %v254_v36, %v250_v42  ;;  %v556_v42 = vunpack.c.l.s4 %v894_v41 }
  0xa1   :  { %v202_v40 = vpop.xlane.xlu1 %201  ;;  %v231_v48 = vsel %vm113_vm4, %v230_v38, %v226_v45 }
  0xa2   :  { %v259_v43 = vrot.slane %v202_v40, %v1105_v33  ;;  %v187_v44 = vpop.xlane.xlu0 %186 }
  0xa3   :  { %v235_v47 = vrot.slane %v187_v44, %v1105_v33  ;;  %v510_v44 = vsub.s32 0, %v1087_v19 }
  0xa4   :  { %v260_v49 = vsel %vm120_vm5, %v259_v43, %v255_v46  ;;  %v557_v43 = vunpack.c.0.s8 %v556_v42 }
  0xa5   :  { %v236_v51 = vsel %vm120_vm5, %v235_v47, %v231_v48  ;;  %v53_v53 = vpop.xlane.xlu1 %52 }
  0xa6   :  { %v261_v54 = vsel %vm146_vm6, %v260_v49, %v236_v51  ;;  %v50_v55 = vpop.xlane.xlu0 %49  ;;  %v98_v8 = vrot.slane %v53_v53, %v1090_v21  ;;  %v560_v45 = vsub.s32 %v557_v43, %v1087_v19 }
  0xa7   :  { %v263_v56 = vadd.f32 %v261_v54, %v152_v50  ;;  %v93_v9 = vrot.slane %v50_v55, %v1096_v26  ;;  %v533_v50 = vsub.s32 1, %v1087_v19 }
  0xa9   :  { %264 = vst.msk [vmem:[#allocation3] sm:$0x3] %vm24_vm0, %v263_v56  ;;  %v68_v57 = vpop.xlane.xlu1 %67  ;;  %v100_v18 = vsel %vm99_vm2, %v98_v8, %v93_v9 }
  0xaa   :  { %v65_v58 = vpop.xlane.xlu0 %64  ;;  %v129_v2 = vrot.slane %v68_v57, %v1090_v21 }
  0xab   :  { %v125_v3 = vrot.slane %v65_v58, %v1096_v26 }
  0xad   :  { %v71_v59 = vpop.xlane.xlu1 %70  ;;  %v130_v16 = vsel %vm99_vm2, %v129_v2, %v125_v3 }
  0xae   :  { %v56_v62 = vpop.xlane.xlu0 %55  ;;  %v134_v10 = vrot.slane %v71_v59, %v1093_v23 }
  0xaf   :  { %v105_v12 = vrot.slane %v56_v62, %v1093_v23 }
  0xb0   :  { %v270_v63 = vld [vmem:[#allocation3] sm:$0x3]  ;;  %v135_v20 = vsel %vm106_vm3, %v134_v10, %v130_v16 }
  0xb1   :  { %v74_v4 = vpop.xlane.xlu1 %73  ;;  %v271_v5 = vmul.f32 0.00390625, %v270_v63  ;;  %v107_v25 = vsel %vm106_vm3, %v105_v12, %v100_v18 }
  0xb2   :  { %v59_v11 = vpop.xlane.xlu0 %58  ;;  %v139_v13 = vrot.slane %v74_v4, %v1099_v27 }
  0xb3   :  { %809 = vmatmul.mubr.msk.f32.vlgmr.msra.gmra.mrb[0].mxu0 %vm282_vm7, %v271_v5  ;;  %v112_v14 = vrot.slane %v59_v11, %v1099_v27 }
  0xb4   :  { %845 = vmatpush3.bf16.msra.mxu0 %v844_v1  ;;  %821 = vmatprep.mubr.msk.f32.mxu0 %vm893_vm1, %v891_v52  ;;  %v140_v28 = vsel %vm113_vm4, %v139_v13, %v135_v20 }
  0xb5   :  { %v77_v17 = vpop.xlane.xlu1 %76  ;;  %846 = vmatprep.subr.bf16.mxu0 %v892_v0  ;;  %v114_v30 = vsel %vm113_vm4, %v112_v14, %v107_v25 }
  0xb6   :  { %v144_v22 = vrot.slane %v77_v17, %v1105_v33  ;;  %v62_v24 = vpop.xlane.xlu0 %61 }
  0xb7   :  { %v119_v29 = vrot.slane %v62_v24, %v1105_v33 }
  0xb8   :  { %v145_v31 = vsel %vm120_vm5, %v144_v22, %v140_v28  ;;  %848 = vmatpush3.bf16.msra.mxu0 %v847_v15 }
  0xb9   :  { %v121_v0 = vsel %vm120_vm5, %v119_v29, %v114_v30  ;;  %819 = vmatprep.subr.mxu0 %v891_v52 }
  0xba   :  { %v147_v35 = vsel %vm146_vm6, %v145_v31, %v121_v0 }
  0xbb   :  { %v149_v36 = vadd.f32 %v147_v35, %v27_v32 }
  0xbc   :  { %820 = vmatpush3.msra.mxu0 %v276_v34 }
  0xbd   :  { %151 = vst.msk [vmem:[#allocation2] sm:$0x3] %vm24_vm0, %v149_v36 }
  0xc4   :  { %v268_v37 = vld [vmem:[#allocation2] sm:$0x3] }
  0xc5   :  { %v269_v38 = vmul.f32 0.00390625, %v268_v37 }
  0xc7   :  { %822 = vmatmul.mubr.msk.f32.vlgmr.msra.gmra.mrb[0].mxu0 %vm282_vm7, %v269_v38 }
 0x19a   :  { %v425_v52 = vpop.f32.mrb[0].mxu0 }
 0x19b   :  { %v823_v40 = vpop.f32.mrb[1].mxu0  ;;  %835 = vmatmul.mubr.msk.f32.vlgmr.msra.gmra.mrb[0].mxu1 %vm282_vm7, %v425_v52 }
 0x26e   :  { %v503_v46 = vpop.f32.mrb[0].mxu1 }
 0x26f   :  { %v507_v47 = vmax.f32 %v503_v46, 0.0  ;;  %v836_v48 = vpop.f32.mrb[1].mxu1 }
 0x271   :  { %v511_v49 = vrot.slane %v507_v47, %v510_v44  ;;  %v561_v51 = vrot.slane %v507_v47, %v560_v45  ;;  %v534_v55 = vrot.slane %v507_v47, %v533_v50 }
 0x273   :  { %v562_v53 = vcombine.high %v561_v51, %v561_v51  ;;  %v569_v54 = vrot.slane %v561_v51, %v560_v45  ;;  %517 = vbcast.lane.b32.xlu1 %v511_v49, 264  ;;  %513 = vbcast.lane.b32.xlu0 %v511_v49, 256 }
 0x275   :  { %v576_v56 = vrot.slane %v562_v53, %v560_v45  ;;  %v1172_v57 = vrot.slane %v569_v54, %v510_v44 }
 0x277   :  { %v1174_v58 = vrot.slane %v576_v56, %v510_v44  ;;  %536 = vbcast.lane.b32.xlu1 %v534_v55, 256  ;;  %521 = vbcast.lane.b32.xlu0 %v511_v49, 272 }
 0x27b   :  { %540 = vbcast.lane.b32.xlu1 %v534_v55, 264  ;;  %525 = vbcast.lane.b32.xlu0 %v511_v49, 280 }
 0x27f   :  { %544 = vbcast.lane.b32.xlu1 %v534_v55, 272  ;;  %529 = vbcast.lane.b32.xlu0 %v511_v49, 288 }
 0x283   :  { %548 = vbcast.lane.b32.xlu1 %v534_v55, 280 }
 0x287   :  { %552 = vbcast.lane.b32.xlu1 %v534_v55, 288 }
 0x2e5   :  { %v518_v19 = vpop.permute.xlu1 %517  ;;  %v514_v59 = vpop.permute.xlu0 %513 }
 0x2e6   :  { %v587_v60 = vmul.f32 %v1172_v57, %v514_v59  ;;  %v588_v1 = vmul.f32 %v1172_v57, %v518_v19 }
 0x2e8   :  { %v597_v2 = vsel %vm282_vm7, %v587_v60, -inf  ;;  %v600_v10 = vsel %vm282_vm7, %v588_v1, -inf }
 0x2e9   :  { %v537_v61 = vpop.permute.xlu1 %536  ;;  %v522_v62 = vpop.permute.xlu0 %521 }
 0x2ea   :  { %v592_v63 = vmul.f32 %v1174_v58, %v537_v61  ;;  %v589_v11 = vmul.f32 %v1172_v57, %v522_v62 }
 0x2ec   :  { %v598_v3 = vsel %vm282_vm7, %v592_v63, -inf  ;;  %v603_v22 = vsel %vm282_vm7, %v589_v11, -inf }
 0x2ed   :  { %v599_v4 = vmax.f32 %v597_v2, %v598_v3  ;;  %v541_v5 = vpop.permute.xlu1 %540  ;;  %v526_v9 = vpop.permute.xlu0 %525 }
 0x2ee   :  { %v593_v6 = vmul.f32 %v1174_v58, %v541_v5  ;;  %v590_v24 = vmul.f32 %v1172_v57, %v526_v9 }
 0x2ef   :  { %v612_v7 = vsub.f32 %v587_v60, %v599_v4  ;;  %v617_v8 = vsub.f32 %v592_v63, %v599_v4 }
 0x2f0   :  { %v601_v12 = vsel %vm282_vm7, %v593_v6, -inf  ;;  %v606_v36 = vsel %vm282_vm7, %v590_v24, -inf }
 0x2f1   :  { %v622_v13 = vmul.f32 1.442695, %v612_v7  ;;  %v632_v14 = vmul.f32 1.442695, %v617_v8  ;;  %v602_v15 = vmax.f32 %v600_v10, %v601_v12  ;;  %v545_v16 = vpop.permute.xlu1 %544  ;;  %v530_v31 = vpop.permute.xlu0 %529 }
 0x2f2   :  { %v594_v17 = vmul.f32 %v1174_v58, %v545_v16  ;;  %v591_v37 = vmul.f32 %v1172_v57, %v530_v31 }
 0x2f3   :  { %861 = vpow2.f32 %v622_v13  ;;  %v613_v18 = vsub.f32 %v588_v1, %v602_v15  ;;  %v618_v20 = vsub.f32 %v593_v6, %v602_v15 }
 0x2f4   :  { %863 = vpow2.f32 %v632_v14  ;;  %v604_v25 = vsel %vm282_vm7, %v594_v17, -inf  ;;  %v609_v45 = vsel %vm282_vm7, %v591_v37, -inf }
 0x2f5   :  { %v624_v28 = vmul.f32 1.442695, %v613_v18  ;;  %v634_v29 = vmul.f32 1.442695, %v618_v20  ;;  %v605_v30 = vmax.f32 %v603_v22, %v604_v25  ;;  %v549_v32 = vpop.permute.xlu1 %548 }
 0x2f6   :  { %v595_v0 = vmul.f32 %v1174_v58, %v549_v32 }
 0x2f7   :  { %865 = vpow2.f32 %v624_v28  ;;  %v614_v34 = vsub.f32 %v589_v11, %v605_v30  ;;  %v619_v35 = vsub.f32 %v594_v17, %v605_v30 }
 0x2f8   :  { %867 = vpow2.f32 %v634_v29  ;;  %v607_v38 = vsel %vm282_vm7, %v595_v0, -inf }
 0x2f9   :  { %v626_v39 = vmul.f32 1.442695, %v614_v34  ;;  %v636_v52 = vmul.f32 1.442695, %v619_v35  ;;  %v608_v40 = vmax.f32 %v606_v36, %v607_v38  ;;  %v553_v41 = vpop.permute.xlu1 %552 }
 0x2fa   :  { %v596_v42 = vmul.f32 %v1174_v58, %v553_v41 }
 0x2fb   :  { %869 = vpow2.f32 %v626_v39  ;;  %v615_v43 = vsub.f32 %v590_v24, %v608_v40  ;;  %v620_v44 = vsub.f32 %v595_v0, %v608_v40 }
 0x2fc   :  { %871 = vpow2.f32 %v636_v52  ;;  %v610_v46 = vsel %vm282_vm7, %v596_v42, -inf }
 0x2fd   :  { %v862_v47 = vpop.eup %861  ;;  %v628_v48 = vmul.f32 1.442695, %v615_v43  ;;  %v638_v49 = vmul.f32 1.442695, %v620_v44  ;;  %v611_v50 = vmax.f32 %v609_v45, %v610_v46 }
 0x2fe   :  { %v864_v51 = vpop.eup %863  ;;  %v642_v53 = vsel %vm282_vm7, %v862_v47, 0.0 }
 0x2ff   :  { %v643_v54 = vsel %vm282_vm7, %v864_v51, 0.0  ;;  %873 = vpow2.f32 %v628_v48  ;;  %v616_v55 = vsub.f32 %v591_v37, %v611_v50  ;;  %v621_v56 = vsub.f32 %v596_v42, %v611_v50 }
 0x300   :  { %v644_v19 = vadd.f32 %v643_v54, %v642_v53  ;;  %875 = vpow2.f32 %v638_v49 }
 0x301   :  { %v866_v59 = vpop.eup %865  ;;  %v630_v60 = vmul.f32 1.442695, %v616_v55  ;;  %v640_v61 = vmul.f32 1.442695, %v621_v56 }
 0x302   :  { %v868_v62 = vpop.eup %867  ;;  %v645_v63 = vsel %vm282_vm7, %v866_v59, 0.0  ;;  %877 = vrcp.f32 %v644_v19 }
 0x303   :  { %v646_v1 = vsel %vm282_vm7, %v868_v62, 0.0  ;;  %879 = vpow2.f32 %v630_v60 }
 0x304   :  { %v647_v2 = vadd.f32 %v646_v1, %v645_v63  ;;  %881 = vpow2.f32 %v640_v61 }
 0x305   :  { %v870_v3 = vpop.eup %869 }
 0x306   :  { %v872_v4 = vpop.eup %871  ;;  %v648_v5 = vsel %vm282_vm7, %v870_v3, 0.0  ;;  %883 = vrcp.f32 %v647_v2 }
 0x307   :  { %v649_v6 = vsel %vm282_vm7, %v872_v4, 0.0 }
 0x308   :  { %v650_v7 = vadd.f32 %v649_v6, %v648_v5 }
 0x309   :  { %v874_v8 = vpop.eup %873 }
 0x30a   :  { %v876_v9 = vpop.eup %875  ;;  %v651_v10 = vsel %vm282_vm7, %v874_v8, 0.0  ;;  %885 = vrcp.f32 %v650_v7 }
 0x30b   :  { %v652_v11 = vsel %vm282_vm7, %v876_v9, 0.0 }
 0x30c   :  { %v878_v12 = vpop.eup %877  ;;  %v653_v13 = vadd.f32 %v652_v11, %v651_v10 }
 0x30d   :  { %v880_v14 = vpop.eup %879  ;;  %v658_v15 = vmul.f32 %v878_v12, %v862_v47  ;;  %v667_v16 = vmul.f32 %v878_v12, %v864_v51 }
 0x30e   :  { %v882_v17 = vpop.eup %881  ;;  %v654_v18 = vsel %vm282_vm7, %v880_v14, 0.0  ;;  %887 = vrcp.f32 %v653_v13 }
 0x30f   :  { %v655_v20 = vsel %vm282_vm7, %v882_v17, 0.0  ;;  %v672_v22 = vmul.f32 %v658_v15, %v1172_v57  ;;  %v677_v24 = vmul.f32 %v667_v16, %v1174_v58 }
 0x310   :  { %v884_v25 = vpop.eup %883  ;;  %v656_v28 = vadd.f32 %v655_v20, %v654_v18 }
 0x311   :  { %v682_v29 = vsel %vm282_vm7, %v672_v22, 0.0  ;;  %v660_v30 = vmul.f32 %v884_v25, %v866_v59  ;;  %v668_v31 = vmul.f32 %v884_v25, %v868_v62  ;;  %v697_v36 = vsel %vm282_vm7, %v677_v24, 0.0 }
 0x312   :  { %683 = vadd.xlane.f32.xlu0 %v682_v29  ;;  %889 = vrcp.f32 %v656_v28 }
 0x313   :  { %v673_v32 = vmul.f32 %v660_v30, %v1172_v57  ;;  %v678_v0 = vmul.f32 %v668_v31, %v1174_v58 }
 0x314   :  { %v886_v34 = vpop.eup %885 }
 0x315   :  { %v685_v35 = vsel %vm282_vm7, %v673_v32, 0.0  ;;  %v669_v37 = vmul.f32 %v886_v34, %v872_v4  ;;  %v662_v38 = vmul.f32 %v886_v34, %v870_v3  ;;  %v700_v41 = vsel %vm282_vm7, %v678_v0, 0.0 }
 0x316   :  { %686 = vadd.xlane.f32.xlu1 %v685_v35  ;;  %698 = vadd.xlane.f32.xlu0 %v697_v36 }
 0x317   :  { %v679_v39 = vmul.f32 %v669_v37, %v1174_v58  ;;  %v674_v52 = vmul.f32 %v662_v38, %v1172_v57 }
 0x318   :  { %v888_v40 = vpop.eup %887 }
 0x319   :  { %v703_v42 = vsel %vm282_vm7, %v679_v39, 0.0  ;;  %v670_v43 = vmul.f32 %v888_v40, %v876_v9  ;;  %v664_v44 = vmul.f32 %v888_v40, %v874_v8  ;;  %v688_v48 = vsel %vm282_vm7, %v674_v52, 0.0 }
 0x31a   :  { %701 = vadd.xlane.f32.xlu0 %v700_v41  ;;  %704 = vadd.xlane.f32.xlu1 %v703_v42 }
 0x31b   :  { %v680_v45 = vmul.f32 %v670_v43, %v1174_v58  ;;  %v675_v46 = vmul.f32 %v664_v44, %v1172_v57 }
 0x31c   :  { %v890_v47 = vpop.eup %889 }
 0x31d   :  { %v706_v49 = vsel %vm282_vm7, %v680_v45, 0.0  ;;  %v671_v50 = vmul.f32 %v890_v47, %v882_v17  ;;  %v666_v51 = vmul.f32 %v890_v47, %v880_v14  ;;  %v691_v55 = vsel %vm282_vm7, %v675_v46, 0.0 }
 0x31e   :  { %689 = vadd.xlane.f32.xlu0 %v688_v48  ;;  %707 = vadd.xlane.f32.xlu1 %v706_v49 }
 0x31f   :  { %v681_v53 = vmul.f32 %v671_v50, %v1174_v58  ;;  %v676_v54 = vmul.f32 %v666_v51, %v1172_v57 }
 0x321   :  { %v709_v56 = vsel %vm282_vm7, %v681_v53, 0.0  ;;  %v694_v19 = vsel %vm282_vm7, %v676_v54, 0.0 }
 0x322   :  { %692 = vadd.xlane.f32.xlu0 %v691_v55  ;;  %710 = vadd.xlane.f32.xlu1 %v709_v56 }
 0x326   :  { %695 = vadd.xlane.f32.xlu0 %v694_v19 }
 0x39f   :  { %v684_v59 = vpop.xlane.xlu0 %683 }
 0x3a0   :  { %v725_v8 = vrot.slane %v684_v59, %v1096_v26 }
 0x3a3   :  { %v687_v60 = vpop.xlane.xlu1 %686  ;;  %v699_v61 = vpop.xlane.xlu0 %698 }
 0x3a4   :  { %v729_v57 = vrot.slane %v687_v60, %v1090_v21  ;;  %v749_v3 = vrot.slane %v699_v61, %v1096_v26 }
 0x3a7   :  { %v705_v62 = vpop.xlane.xlu1 %704  ;;  %v702_v63 = vpop.xlane.xlu0 %701 }
 0x3a8   :  { %v753_v58 = vrot.slane %v702_v63, %v1090_v21  ;;  %v758_v6 = vrot.slane %v705_v62, %v1093_v23  ;;  %v730_v21 = vsel %vm99_vm2, %v729_v57, %v725_v8 }
 0x3aa   :  { %v754_v9 = vsel %vm99_vm2, %v753_v58, %v749_v3 }
 0x3ab   :  { %v708_v1 = vpop.xlane.xlu1 %707  ;;  %v690_v2 = vpop.xlane.xlu0 %689  ;;  %v759_v14 = vsel %vm106_vm3, %v758_v6, %v754_v9 }
 0x3ac   :  { %v734_v7 = vrot.slane %v690_v2, %v1093_v23  ;;  %v763_v10 = vrot.slane %v708_v1, %v1099_v27 }
 0x3ae   :  { %v735_v15 = vsel %vm106_vm3, %v734_v7, %v730_v21  ;;  %v764_v23 = vsel %vm113_vm4, %v763_v10, %v759_v14 }
 0x3af   :  { %v711_v4 = vpop.xlane.xlu1 %710  ;;  %v693_v5 = vpop.xlane.xlu0 %692 }
 0x3b0   :  { %v739_v11 = vrot.slane %v693_v5, %v1099_v27  ;;  %v768_v12 = vrot.slane %v711_v4, %v1105_v33 }
 0x3b2   :  { %v740_v26 = vsel %vm113_vm4, %v739_v11, %v735_v15  ;;  %v769_v17 = vsel %vm120_vm5, %v768_v12, %v764_v23 }
 0x3b3   :  { %v696_v13 = vpop.xlane.xlu0 %695 }
 0x3b4   :  { %v744_v16 = vrot.slane %v696_v13, %v1105_v33 }
 0x3b6   :  { %v745_v18 = vsel %vm120_vm5, %v744_v16, %v740_v26 }
 0x3b7   :  { %v770_v27 = vsel %vm146_vm6, %v769_v17, %v745_v18 }
 0x3b8   :  { %772 = vst.msk [vmem:[%s1254_s5] sm:$0x3] %vm24_vm0, %v770_v27 }

</bundles_post_ra>
